<compile_context>
chip_gen: v5e
topology: v5e:2x2
jax: 0.10.0
libtpu: 0.0.40
codegen_flags: <defaults>
</compile_context>

<pallas_src>
import jax
import jax.numpy as jnp
from jax.experimental import pallas as pl
from jax.experimental.pallas import tpu as pltpu

LANE = 128            # vreg lane width
SUBLANE = 8           # f32 sublane packing (x is fed to the kernel as f32)
NEG_INF = -1e30
MAX_BATCH_TILE = 4096  # keeps x/out double-buffers + f32 intermediates < VMEM limit
SPLIT_ROWS = 256       # batches >= this get >=2 grid steps (both v7x TensorCores)


def _round_up(n, m):
    return (n + m - 1) // m * m


def mlp_kernel(x_ref, w1_ref, b1_ref, w2_ref, b2_ref, w3_ref, b3_ref, o_ref):
    # x arrives as raw f32 (no wrapper-side pad/cast HBM round trip); the bf16
    # cast for the MXU is a free VPU op here.
    x = x_ref[...].astype(jnp.bfloat16)

    # ---- linear1 + ReLU (bf16 x bf16 -> f32 accumulate, f32 elementwise) ----
    h1 = jnp.dot(x, w1_ref[...], preferred_element_type=jnp.float32)
    h1 = jnp.maximum(h1 + b1_ref[...], 0.0)

    # ---- linear2 + softmax over the feature dim ----
    # Padded hid2 lanes carry bias = NEG_INF (f32), so exp() maps them to
    # exactly 0 and they never enter the row max or the denominator.
    h2 = jnp.dot(h1.astype(jnp.bfloat16), w2_ref[...],
                 preferred_element_type=jnp.float32)
    h2 = h2 + b2_ref[...]
    m = jnp.max(h2, axis=1, keepdims=True)
    e = jnp.exp(h2 - m)
    denom = jnp.sum(e, axis=1, keepdims=True)
    p = e * pl.reciprocal(denom, approx=True)   # EUP slot, ~free

    # ---- linear3 ----
    out = jnp.dot(p.astype(jnp.bfloat16), w3_ref[...],
                  preferred_element_type=jnp.float32)
    o_ref[...] = (out + b3_ref[...]).astype(o_ref.dtype)


def prep_params(params, in_size, hid1, hid2, out_size):
    """One-time prep (outside the per-call hot path): transpose to (in, out),
    pad lane dims to 128, cast weights to bf16.  Biases stay f32 (v5e-safe
    elementwise math, and the NEG_INF softmax-padding trick requires f32 b2)."""
    assert in_size > 0 and hid1 > 0 and hid2 > 0 and out_size > 0, \
        "need at least one real column in every layer (softmax denom relies on it)"

    h1p = _round_up(hid1, LANE)
    h2p = _round_up(hid2, LANE)
    outp = _round_up(out_size, LANE)

    def pad2(a, rows, cols):
        return jnp.pad(a, ((0, rows - a.shape[0]), (0, cols - a.shape[1])))

    # w1's contraction dim stays at the raw in_size (x is fed unpadded).
    # Lane (output) dims are padded to 128 only — never 256.
    w1 = pad2(params["w1"].T, in_size, h1p).astype(jnp.bfloat16)
    w2 = pad2(params["w2"].T, h1p, h2p).astype(jnp.bfloat16)
    w3 = pad2(params["w3"].T, h2p, outp).astype(jnp.bfloat16)

    b1 = jnp.pad(params["b1"], (0, h1p - hid1))[None, :].astype(jnp.float32)
    # Padded softmax lanes get a huge negative bias -> exp underflows to 0.
    b2 = jnp.pad(params["b2"], (0, h2p - hid2),
                 constant_values=NEG_INF)[None, :].astype(jnp.float32)
    b3 = jnp.pad(params["b3"], (0, outp - out_size))[None, :].astype(jnp.float32)

    return {"w1": w1, "b1": b1, "w2": w2, "b2": b2, "w3": w3, "b3": b3,
            "dims": (in_size, hid1, hid2, out_size)}


def _choose_batch_layout(batch, batch_tile):
    """Pick (tile rows, padded batch, num grid steps).

    * Large batches: ~batch_tile rows/step, chosen as an even split so the
      trailing tile is never mostly dead padding.
    * Medium batches (>= SPLIT_ROWS rows): 2 steps so both v7x TensorCores run.
    * Small batches: single tile (extra steps would only add ~0.35 us each).
    """
    batch_tile = max(SUBLANE, min(int(batch_tile), MAX_BATCH_TILE))
    bp8 = _round_up(batch, SUBLANE)
    if bp8 > batch_tile:
        nt = pl.cdiv(bp8, batch_tile)
    elif bp8 >= SPLIT_ROWS:
        nt = 2
    else:
        nt = 1
    tb = _round_up(pl.cdiv(bp8, nt), SUBLANE)
    return tb, nt * tb, nt


def neural_net_forward(x, prepped, *, batch_tile=512, out_dtype=jnp.float32):
    in_size, hid1, hid2, out_size = prepped["dims"]
    w1, b1 = prepped["w1"], prepped["b1"]
    w2, b2 = prepped["w2"], prepped["b2"]
    w3, b3 = prepped["w3"], prepped["b3"]
    h1p, h2p, outp = w1.shape[1], w2.shape[1], w3.shape[1]

    batch = x.shape[0]
    assert x.shape[1] == in_size
    tb, bp, nt = _choose_batch_layout(batch, batch_tile)

    # Only the batch (sublane) axis is padded; x keeps its raw feature width
    # and f32 dtype — no inflated HBM copy of x.
    xp = x.astype(jnp.float32)
    if bp != batch:
        xp = jnp.pad(xp, ((0, bp - batch), (0, 0)))

    flops = 2 * bp * (in_size * h1p + h1p * h2p + h2p * outp)
    transcendentals = bp * h2p
    bytes_accessed = (bp * in_size * 4
                      + (w1.size + w2.size + w3.size) * 2
                      + (b1.size + b2.size + b3.size) * 4
                      + bp * outp * jnp.dtype(out_dtype).itemsize)

    out = pl.pallas_call(
        mlp_kernel,
        out_shape=jax.ShapeDtypeStruct((bp, outp), out_dtype),
        grid=(nt,),
        in_specs=[
            pl.BlockSpec((tb, in_size), lambda i: (i, 0)),   # x: batch-tiled, f32
            pl.BlockSpec((in_size, h1p), lambda i: (0, 0)),  # weights & biases
            pl.BlockSpec((1, h1p), lambda i: (0, 0)),        # stay VMEM-resident
            pl.BlockSpec((h1p, h2p), lambda i: (0, 0)),      # across all steps
            pl.BlockSpec((1, h2p), lambda i: (0, 0)),
            pl.BlockSpec((h2p, outp), lambda i: (0, 0)),
            pl.BlockSpec((1, outp), lambda i: (0, 0)),
        ],
        out_specs=pl.BlockSpec((tb, outp), lambda i: (i, 0)),
        compiler_params=pltpu.CompilerParams(
            dimension_semantics=("parallel",),   # batch shards across v7x's 2 TCs
            vmem_limit_bytes=32 * 1024 * 1024,
        ),
        cost_estimate=pl.CostEstimate(
            flops=flops,
            transcendentals=transcendentals,
            bytes_accessed=bytes_accessed,
        ),
    )(xp, w1, b1, w2, b2, w3, b3)

    # Strip batch / output-column padding.  (The kernel itself always writes a
    # lane-dense 128-wide slab so stores stay unmasked.)
    return out[:batch, :out_size]


def init_params(key, in_size, hid1, hid2, out_size):
    """Deterministic synthetic init in PyTorch nn.Linear convention
    (w: (out, in), b: (out,))."""
    ks = jax.random.split(key, 6)
    s1 = 1.0 / jnp.sqrt(in_size)
    s2 = 1.0 / jnp.sqrt(hid1)
    s3 = 1.0 / jnp.sqrt(hid2)
    return {
        "w1": jax.random.uniform(ks[0], (hid1, in_size), jnp.float32, -s1, s1),
        "b1": jax.random.uniform(ks[1], (hid1,), jnp.float32, -s1, s1),
        "w2": jax.random.uniform(ks[2], (hid2, hid1), jnp.float32, -s2, s2),
        "b2": jax.random.uniform(ks[3], (hid2,), jnp.float32, -s2, s2),
        "w3": jax.random.uniform(ks[4], (out_size, hid2), jnp.float32, -s3, s3),
        "b3": jax.random.uniform(ks[5], (out_size,), jnp.float32, -s3, s3),
    }


def reference_forward(x, params):
    """Pure-JAX f32 reference mirroring the PyTorch forward exactly."""
    h1 = jnp.maximum(x @ params["w1"].T + params["b1"], 0.0)
    h2 = h1 @ params["w2"].T + params["b2"]
    p = jax.nn.softmax(h2, axis=1)
    return p @ params["w3"].T + params["b3"]


if __name__ == "__main__":
    in_size, hid1, hid2, out_size = 32, 64, 32, 10

    key = jax.random.PRNGKey(0)
    kx, kx2, kp = jax.random.split(key, 3)
    params = init_params(kp, in_size, hid1, hid2, out_size)

    # One-time weight prep (transpose + pad + bf16 cast) -- not in the hot path.
    prepped = prep_params(params, in_size, hid1, hid2, out_size)

    # Case 1: tiny batch -> single grid step.
    batch = 8
    x = jax.random.normal(kx, (batch, in_size), dtype=jnp.float32)
    out = jax.block_until_ready(neural_net_forward(x, prepped))
    ref = reference_forward(x, params)
    assert out.shape == (batch, out_size)
    # bf16 MXU operands + approx reciprocal => relaxed tolerance vs f32 reference.
    assert jnp.allclose(out, ref, atol=1e-2, rtol=1e-2), "mismatch (batch=8)"

    # Case 2: medium, non-multiple-of-8 batch -> 2 even grid steps (exercises
    # the v7x two-TensorCore path and the batch-padding/even-split logic).
    batch2 = 300
    x2 = jax.random.normal(kx2, (batch2, in_size), dtype=jnp.float32)
    out2 = jax.block_until_ready(neural_net_forward(x2, prepped))
    ref2 = reference_forward(x2, params)
    assert out2.shape == (batch2, out_size)
    assert jnp.allclose(out2, ref2, atol=1e-2, rtol=1e-2), "mismatch (batch=300)"

    print("KERNEL_OK")
</pallas_src>

<mosaic_0001>
module attributes {stable_mosaic.version = 11 : i64} {
  func.func @mlp_kernel(%arg0: i32, %arg1: memref<8x32xf32, #tpu.memory_space<vmem>>, %arg2: memref<32x128xbf16, #tpu.memory_space<vmem>>, %arg3: memref<1x128xf32, #tpu.memory_space<vmem>>, %arg4: memref<128x128xbf16, #tpu.memory_space<vmem>>, %arg5: memref<1x128xf32, #tpu.memory_space<vmem>>, %arg6: memref<128x128xbf16, #tpu.memory_space<vmem>>, %arg7: memref<1x128xf32, #tpu.memory_space<vmem>>, %arg8: memref<8x128xf32, #tpu.memory_space<vmem>>) attributes {dimension_semantics = [#tpu.dimension_semantics<parallel>], iteration_bounds = array<i64: 1>, scalar_prefetch = 0 : i64, scratch_operands = 0 : i64, tpu.core_type = #tpu.core_type<tc>, window_params = [{transform_indices = @transform_0, window_bounds = array<i64: 8, 32>}, {pipeline_mode = #tpu.pipeline_mode<synchronous>, transform_indices = @transform_1, window_bounds = array<i64: 32, 128>}, {pipeline_mode = #tpu.pipeline_mode<synchronous>, transform_indices = @transform_2, window_bounds = array<i64: 1, 128>}, {pipeline_mode = #tpu.pipeline_mode<synchronous>, transform_indices = @transform_3, window_bounds = array<i64: 128, 128>}, {pipeline_mode = #tpu.pipeline_mode<synchronous>, transform_indices = @transform_4, window_bounds = array<i64: 1, 128>}, {pipeline_mode = #tpu.pipeline_mode<synchronous>, transform_indices = @transform_5, window_bounds = array<i64: 128, 128>}, {pipeline_mode = #tpu.pipeline_mode<synchronous>, transform_indices = @transform_6, window_bounds = array<i64: 1, 128>}, {transform_indices = @transform_7, window_bounds = array<i64: 8, 128>}]} {
    %c0 = arith.constant 0 : index
    %c0_0 = arith.constant 0 : index
    %0 = vector.load %arg1[%c0, %c0_0] : memref<8x32xf32, #tpu.memory_space<vmem>>, vector<8x32xf32>
    %1 = arith.truncf %0 : vector<8x32xf32> to vector<8x32xbf16>
    %c0_1 = arith.constant 0 : index
    %c0_2 = arith.constant 0 : index
    %2 = vector.load %arg2[%c0_1, %c0_2] : memref<32x128xbf16, #tpu.memory_space<vmem>>, vector<32x128xbf16>
    %cst = arith.constant dense<0.000000e+00> : vector<8x128xf32>
    %3 = tpu.matmul %1, %2, %cst {dimension_numbers = #tpu.dot_dimension_numbers<[1], [0], [0], [1], [0, 0, 1, 1], [], []>} : vector<8x32xbf16>, vector<32x128xbf16>, vector<8x128xf32> -> vector<8x128xf32>
    %c0_3 = arith.constant 0 : index
    %c0_4 = arith.constant 0 : index
    %4 = vector.load %arg3[%c0_3, %c0_4] : memref<1x128xf32, #tpu.memory_space<vmem>>, vector<1x128xf32>
    %5 = vector.broadcast %4 : vector<1x128xf32> to vector<8x128xf32>
    %6 = arith.addf %3, %5 : vector<8x128xf32>
    %cst_5 = arith.constant 0.000000e+00 : f32
    %7 = vector.broadcast %cst_5 : f32 to vector<8x128xf32>
    %8 = arith.maximumf %6, %7 : vector<8x128xf32>
    %9 = arith.truncf %8 : vector<8x128xf32> to vector<8x128xbf16>
    %c0_6 = arith.constant 0 : index
    %c0_7 = arith.constant 0 : index
    %10 = vector.load %arg4[%c0_6, %c0_7] : memref<128x128xbf16, #tpu.memory_space<vmem>>, vector<128x128xbf16>
    %cst_8 = arith.constant dense<0.000000e+00> : vector<8x128xf32>
    %11 = tpu.matmul %9, %10, %cst_8 {dimension_numbers = #tpu.dot_dimension_numbers<[1], [0], [0], [1], [0, 0, 1, 1], [], []>} : vector<8x128xbf16>, vector<128x128xbf16>, vector<8x128xf32> -> vector<8x128xf32>
    %c0_9 = arith.constant 0 : index
    %c0_10 = arith.constant 0 : index
    %12 = vector.load %arg5[%c0_9, %c0_10] : memref<1x128xf32, #tpu.memory_space<vmem>>, vector<1x128xf32>
    %13 = vector.broadcast %12 : vector<1x128xf32> to vector<8x128xf32>
    %14 = arith.addf %11, %13 : vector<8x128xf32>
    %cst_11 = arith.constant dense<0xFF800000> : vector<8xf32>
    %15 = vector.multi_reduction <maximumf>, %14, %cst_11 [1] : vector<8x128xf32> to vector<8xf32>
    %16 = vector.shape_cast %15 : vector<8xf32> to vector<8x1xf32>
    %17 = vector.broadcast %16 : vector<8x1xf32> to vector<8x128xf32>
    %18 = arith.subf %14, %17 : vector<8x128xf32>
    %19 = math.exp %18 : vector<8x128xf32>
    %cst_12 = arith.constant dense<0.000000e+00> : vector<8xf32>
    %20 = vector.multi_reduction <add>, %19, %cst_12 [1] : vector<8x128xf32> to vector<8xf32>
    %21 = vector.shape_cast %20 : vector<8xf32> to vector<8x1xf32>
    %22 = tpu.reciprocal %21 {approx = true} : vector<8x1xf32> -> vector<8x1xf32>
    %23 = vector.broadcast %22 : vector<8x1xf32> to vector<8x128xf32>
    %24 = arith.mulf %19, %23 : vector<8x128xf32>
    %25 = arith.truncf %24 : vector<8x128xf32> to vector<8x128xbf16>
    %c0_13 = arith.constant 0 : index
    %c0_14 = arith.constant 0 : index
    %26 = vector.load %arg6[%c0_13, %c0_14] : memref<128x128xbf16, #tpu.memory_space<vmem>>, vector<128x128xbf16>
    %cst_15 = arith.constant dense<0.000000e+00> : vector<8x128xf32>
    %27 = tpu.matmul %25, %26, %cst_15 {dimension_numbers = #tpu.dot_dimension_numbers<[1], [0], [0], [1], [0, 0, 1, 1], [], []>} : vector<8x128xbf16>, vector<128x128xbf16>, vector<8x128xf32> -> vector<8x128xf32>
    %c0_16 = arith.constant 0 : index
    %c0_17 = arith.constant 0 : index
    %28 = vector.load %arg7[%c0_16, %c0_17] : memref<1x128xf32, #tpu.memory_space<vmem>>, vector<1x128xf32>
    %29 = vector.broadcast %28 : vector<1x128xf32> to vector<8x128xf32>
    %30 = arith.addf %27, %29 : vector<8x128xf32>
    %c0_18 = arith.constant 0 : index
    %c0_19 = arith.constant 0 : index
    %31 = vector.load %arg8[%c0_18, %c0_19] : memref<8x128xf32, #tpu.memory_space<vmem>>, vector<8x128xf32>
    tpu.vector_store %arg8[%c0_18, %c0_19], %30 {strides = array<i32>} : memref<8x128xf32, #tpu.memory_space<vmem>>, vector<8x128xf32>,
    return
  }
  func.func @transform_0(%arg0: i32) -> (i32, i32) {
    %c0_i32 = arith.constant 0 : i32
    %c0_i32_0 = arith.constant 0 : i32
    return %arg0, %c0_i32 : i32, i32
  }
  func.func @transform_1(%arg0: i32) -> (i32, i32) {
    %c0_i32 = arith.constant 0 : i32
    %c0_i32_0 = arith.constant 0 : i32
    %c0_i32_1 = arith.constant 0 : i32
    return %c0_i32, %c0_i32_0 : i32, i32
  }
  func.func @transform_2(%arg0: i32) -> (i32, i32) {
    %c0_i32 = arith.constant 0 : i32
    %c0_i32_0 = arith.constant 0 : i32
    %c0_i32_1 = arith.constant 0 : i32
    return %c0_i32, %c0_i32_0 : i32, i32
  }
  func.func @transform_3(%arg0: i32) -> (i32, i32) {
    %c0_i32 = arith.constant 0 : i32
    %c0_i32_0 = arith.constant 0 : i32
    %c0_i32_1 = arith.constant 0 : i32
    return %c0_i32, %c0_i32_0 : i32, i32
  }
  func.func @transform_4(%arg0: i32) -> (i32, i32) {
    %c0_i32 = arith.constant 0 : i32
    %c0_i32_0 = arith.constant 0 : i32
    %c0_i32_1 = arith.constant 0 : i32
    return %c0_i32, %c0_i32_0 : i32, i32
  }
  func.func @transform_5(%arg0: i32) -> (i32, i32) {
    %c0_i32 = arith.constant 0 : i32
    %c0_i32_0 = arith.constant 0 : i32
    %c0_i32_1 = arith.constant 0 : i32
    return %c0_i32, %c0_i32_0 : i32, i32
  }
  func.func @transform_6(%arg0: i32) -> (i32, i32) {
    %c0_i32 = arith.constant 0 : i32
    %c0_i32_0 = arith.constant 0 : i32
    %c0_i32_1 = arith.constant 0 : i32
    return %c0_i32, %c0_i32_0 : i32, i32
  }
  func.func @transform_7(%arg0: i32) -> (i32, i32) {
    %c0_i32 = arith.constant 0 : i32
    %c0_i32_0 = arith.constant 0 : i32
    return %arg0, %c0_i32 : i32, i32
  }
}

</mosaic_0001>

<bundles_post_ra>
// kernel: tpu_custom_call.1
= control target key start
LH: loop header
LB: loop body
LE: loop exit
PB: predicated region body
PF: predicated region fallthrough
CT: control target
= control target key end

     0   :  { %12 = vsyncpa [#allocation3], 0  ;;  %s626_s0 = inlined_call_operand.hbm [shape: f32[8,32], index: 0, kind: input, shape index: {}]   ;;  %s627_s1 = inlined_call_operand.hbm [shape: bf16[32,128], index: 1, kind: input, shape index: {}]   ;;  %s628_s2 = inlined_call_operand.vmem [shape: f32[1,128], index: 2, kind: input, shape index: {}]   ;;  %s629_s3 = inlined_call_operand.hbm [shape: bf16[128,128], index: 3, kind: input, shape index: {}]   ;;  %s630_s4 = inlined_call_operand.vmem [shape: f32[1,128], index: 4, kind: input, shape index: {}]   ;;  %s631_s5 = inlined_call_operand.hbm [shape: bf16[128,128], index: 5, kind: input, shape index: {}]   ;;  %s632_s6 = inlined_call_operand.vmem [shape: f32[1,128], index: 6, kind: input, shape index: {}]   ;;  %s633_s7 = inlined_call_operand.hbm [shape: f32[8,128], index: 7, kind: output, shape index: {}]  }
   0x1   :  { %13 = vsyncpa [#allocation6], 0 }
   0x2   :  { %14 = vsyncpa [#allocation9], 0  ;;  %s31_s26 = sshll.u32 %s627_s1, 4  ;;  %s32_s26 = int_to_ptr.hbm [resolvable:$true] %s31_s26 }
   0x3   :  { %15 = vsyncpa [#allocation4], 0  ;;  %s555_s27 = smov [#allocation5]   ;;  %s21_s8 = sshll.u32 %s626_s0, 4  ;;  %s22_s8 = int_to_ptr.hbm [resolvable:$true] %s21_s8 }
   0x4   :  { %s33_s28 = sshll.u32 %s555_s27, 4  ;;  %s556_s9 = smov 64   ;;  %s34_s28 = int_to_ptr.vmem [resolvable:$true] %s33_s28 }
   0x5   :  { %s557_s10 = smov 4   ;;  %s558_s11 = smov [#allocation2]  }
   0x6   :  { %39 = dma.hbm_to_vmem [thread:$0]  %s32_s26, 256, %s34_s28, [#allocation6], %s556_s9, %s556_s9, %s557_s10  }
   0x7   :  { %s23_s12 = sshll.u32 %s558_s11, 4  ;;  %s46_s15 = sshll.u32 %s629_s3, 4  ;;  %s24_s12 = int_to_ptr.vmem [resolvable:$true] %s23_s12  ;;  %s47_s15 = int_to_ptr.hbm [resolvable:$true] %s46_s15 }
   0x8   :  { %26 = dma.hbm_to_vmem [thread:$0]  %s22_s8, 128, %s24_s12, [#allocation3]  }
   0x9   :  { %s61_s17 = sshll.u32 %s631_s5, 4  ;;  %s559_s18 = smov [#allocation7]   ;;  %s62_s17 = int_to_ptr.hbm [resolvable:$true] %s61_s17 }
   0xa   :  { %s48_s19 = sshll.u32 %s559_s18, 4  ;;  %s560_s0 = smov [#allocation8]   ;;  %s49_s19 = int_to_ptr.vmem [resolvable:$true] %s48_s19 }
   0xb   :  { %54 = dma.hbm_to_vmem [thread:$0]  %s47_s15, 1024, %s49_s19, [#allocation6], %s556_s9, %s556_s9, %s557_s10  }
   0xc   :  { %s63_s20 = sshll.u32 %s560_s0, 4  ;;  %s64_s20 = int_to_ptr.vmem [resolvable:$true] %s63_s20 }
   0xd   :  { %69 = dma.hbm_to_vmem [thread:$0]  %s62_s17, 1024, %s64_s20, [#allocation9], %s556_s9, %s556_s9, %s557_s10  }
   0xe   :  { %547 = dma.done.wait [#allocation3], 128  }
   0xf   :  { %548 = vsyncadd [#allocation3], 4294967168 }
  0x10   :  { %549 = dma.done.wait [#allocation6], 1280  }
  0x11   :  { %550 = vsyncadd [#allocation6], 4294966016 }
  0x12   :  { %551 = dma.done.wait [#allocation9], 1024  }
  0x13   :  { %552 = vsyncadd [#allocation9], 4294966272  ;;  %v396_v0 = vld [vmem:[#allocation5 + $0x8] sm:$0xff]  ;;  %v395_v2 = vld [vmem:[#allocation5] sm:$0xff]  ;;  %vm111_vm0 = vcmask 261120   ;;  %s561_s23 = smov [#allocation10]  }
  0x14   :  { %v404_v1 = vld [vmem:[#allocation7 + $0x38] sm:$0xff]  ;;  %121 = vmatpush.bf16.msra.mxu0 %v396_v0  ;;  %v89_v3 = vld [vmem:[#allocation2] sm:$0xff]  ;;  %v403_v4 = vld [vmem:[#allocation7 + $0x30] sm:$0xff]  ;;  %s308_s24 = sshll.u32 %s561_s23, 4  ;;  %s310_s27 = sshll.u32 %s633_s7, 4  ;;  %s309_s24 = int_to_ptr.vmem [resolvable:$true] %s308_s24  ;;  %s311_s27 = int_to_ptr.hbm [resolvable:$true] %s310_s27 }
  0x15   :  { %198 = vmatpush.bf16.msra.mxu1 %v404_v1  ;;  %v90_v5 = vpack.c.bf16 %v89_v3, %v89_v3  ;;  %v402_v6 = vld [vmem:[#allocation7 + $0x28] sm:$0xff]  ;;  %v401_v7 = vld [vmem:[#allocation7 + $0x20] sm:$0xff]  ;;  %v400_v8 = vld [vmem:[#allocation7 + $0x18] sm:$0xff] }
  0x16   :  { %v399_v9 = vld [vmem:[#allocation7 + $0x10] sm:$0xff]  ;;  %v398_v10 = vld [vmem:[#allocation7 + $0x8] sm:$0xff]  ;;  %v397_v11 = vld [vmem:[#allocation7] sm:$0xff] }
  0x17   :  { %v420_v12 = vld [vmem:[%s628_s2] ss:$0 sm:$0xff]  ;;  %v412_v22 = vld [vmem:[#allocation8 + $0x38] sm:$0xff]  ;;  %v411_v23 = vld [vmem:[#allocation8 + $0x30] sm:$0xff] }
  0x18   :  { %122 = vmatpush.bf16.msra.mxu0 %v395_v2  ;;  %v421_v18 = vld [vmem:[%s630_s4] ss:$0 sm:$0xff]  ;;  %289 = vmatpush.bf16.msra.mxu2 %v412_v22  ;;  %v409_v25 = vld [vmem:[#allocation8 + $0x20] sm:$0xff]  ;;  %v408_v26 = vld [vmem:[#allocation8 + $0x18] sm:$0xff] }
  0x19   :  { %199 = vmatpush.bf16.msra.mxu1 %v403_v4  ;;  %v410_v24 = vld [vmem:[#allocation8 + $0x28] sm:$0xff]  ;;  %v407_v31 = vld [vmem:[#allocation8 + $0x10] sm:$0xff]  ;;  %v405_v33 = vld [vmem:[#allocation8] sm:$0xff] }
  0x1a   :  { %v406_v32 = vld [vmem:[#allocation8 + $0x8] sm:$0xff] }
  0x1b   :  { %330 = vmatmul.msk.bf16.vlgmr.msra.gmra.mxu0 %vm111_vm0, %v90_v5  ;;  %v422_v38 = vld [vmem:[%s632_s6] ss:$0 sm:$0xff] }
  0x1c   :  { %290 = vmatpush.bf16.msra.mxu2 %v411_v23 }
  0x1d   :  { %200 = vmatpush.bf16.msra.mxu1 %v402_v6 }
  0x20   :  { %291 = vmatpush.bf16.msra.mxu2 %v410_v24 }
  0x21   :  { %201 = vmatpush.bf16.msra.mxu1 %v401_v7 }
  0x24   :  { %292 = vmatpush.bf16.msra.mxu2 %v409_v25 }
  0x25   :  { %202 = vmatpush.bf16.msra.mxu1 %v400_v8 }
  0x28   :  { %293 = vmatpush.bf16.msra.mxu2 %v408_v26 }
  0x29   :  { %203 = vmatpush.bf16.msra.mxu1 %v399_v9 }
  0x2c   :  { %294 = vmatpush.bf16.msra.mxu2 %v407_v31 }
  0x2d   :  { %204 = vmatpush.bf16.msra.mxu1 %v398_v10 }
  0x30   :  { %295 = vmatpush.bf16.msra.mxu2 %v406_v32 }
  0x31   :  { %205 = vmatpush.bf16.msra.mxu1 %v397_v11 }
  0x34   :  { %296 = vmatpush.bf16.msra.mxu2 %v405_v33 }
  0x98   :  { %v124_v13 = vpop.f32.mrf.mxu0 }
  0x99   :  { %v125_v14 = vadd.f32 %v420_v12, %v124_v13 }
  0x9b   :  { %v128_v15 = vmax.f32 %v125_v14, 0.0 }
  0x9d   :  { %v129_v16 = vpack.c.bf16 %v128_v15, %v128_v15 }
  0x9f   :  { %206 = vmatmul.bf16.vlgmr.msra.gmra.mxu1 %v129_v16 }
  0xa0   :  { %v126_v17 = vpop.f32.mrf.mxu0 }
 0x11c   :  { %v207_v19 = vpop.f32.mrf.mxu1 }
 0x11d   :  { %v208_v20 = vadd.f32 %v421_v18, %v207_v19 }
 0x11f   :  { %211 = vmax.xlane.f32.xlu0 %v208_v20 }
 0x124   :  { %v209_v21 = vpop.f32.mrf.mxu1 }
 0x192   :  { %v212_v27 = vpop.xlane.xlu0 %211 }
 0x193   :  { %v213_v28 = vsub.f32 %v208_v20, %v212_v27 }
 0x195   :  { %v214_v29 = vmul.f32 1.442695, %v213_v28 }
 0x197   :  { %423 = vpow2.f32 %v214_v29 }
 0x19d   :  { %v424_v30 = vpop.eup %423 }
 0x19e   :  { %216 = vadd.xlane.f32.xlu0 %v424_v30 }
 0x211   :  { %v217_v34 = vpop.xlane.xlu0 %216 }
 0x212   :  { %425 = vrcp.f32 %v217_v34 }
 0x218   :  { %v426_v35 = vpop.eup %425 }
 0x219   :  { %v219_v36 = vmul.f32 %v426_v35, %v424_v30 }
 0x21b   :  { %v220_v37 = vpack.c.bf16 %v219_v36, %v219_v36 }
 0x21d   :  { %297 = vmatmul.bf16.vlgmr.msra.gmra.mxu2 %v220_v37 }
 0x2a0   :  { %v298_v39 = vpop.f32.mrf.mxu2 }
 0x2a1   :  { %v299_v40 = vadd.f32 %v422_v38, %v298_v39 }
 0x2a3   :  { %302 = vst [vmem:[#allocation10] sm:$0xff] %v299_v40 }
 0x2a4   :  { %313 = dma.vmem_to_hbm [thread:$0]  %s309_s24, 128, %s311_s27, [#allocation4]  }
 0x2a8   :  { %v300_v41 = vpop.f32.mrf.mxu2 }
 0x2a9   :  { %553 = dma.done.wait [#allocation4], 128  }
 0x2aa   :  { %554 = vsyncadd [#allocation4], 4294967168 }
 0x2ab   :  { %318 = vsyncpa [#allocation3], 1 }
 0x2ac   :  { %319 = vsyncpa [#allocation6], 1 }
 0x2ad   :  { %320 = vsyncpa [#allocation9], 1 }
 0x2ae   :  { %321 = vsyncpa [#allocation4], 1 }

</bundles_post_ra>
